<compile_context>
chip_gen: v5e
topology: v5e:2x2
jax: 0.10.0
libtpu: 0.0.40
codegen_flags: <defaults>
</compile_context>

<pallas_src>
import functools

import jax
import jax.numpy as jnp
import numpy as np
from jax.experimental import pallas as pl
from jax.experimental.pallas import tpu as pltpu


def _eag_kernel(idx_ref, src_ref, tar_ref, out_ref):
    """One (batch, N-tile, D-tile) block.

    idx_ref: SMEM (B*M,) int32   (scalar-prefetched)
    src_ref: VMEM (1, TN, TD)
    tar_ref: VMEM (1, M, TD)
    out_ref: VMEM (1, TN, TD)
    """
    b = pl.program_id(0)
    nt = pl.program_id(1)

    tn = src_ref.shape[1]
    m_rows = tar_ref.shape[1]

    # Global row ids covered by this N tile: (TN, 1).
    row_ids = jax.lax.broadcasted_iota(jnp.int32, (tn, 1), 0) + nt * tn

    src = src_ref[0]                                    # (TN, TD), native dtype

    present = jnp.zeros((tn, 1), dtype=jnp.bool_)       # rows to erase
    acc = jnp.zeros(src.shape, dtype=jnp.float32)       # scatter-added tar rows

    # M is small for this module: unrolled VPU row scatter instead of a
    # lane-sparse one-hot MXU matmul.  Duplicate indices accumulate, matching
    # torch.index_add.  (For M >= ~128 a one-hot MXU path would win.)
    for m in range(m_rows):
        g = idx_ref[b * m_rows + m]                     # scalar read from SMEM
        match = row_ids == g                            # (TN, 1)
        present = jnp.logical_or(present, match)
        tar_row = tar_ref[0, m:m + 1, :].astype(jnp.float32)   # (1, TD)
        acc = acc + jnp.where(match, tar_row, 0.0)

    erased = jnp.where(present, jnp.zeros_like(src), src)
    out = erased.astype(jnp.float32) + acc
    out_ref[0] = out.astype(out_ref.dtype)


def _pick_tile(dim, max_tile, align):
    """Largest block <= max_tile satisfying the (8,128) rule for `dim`."""
    if dim <= max_tile:
        return dim            # a block equal to the full dim is always legal
    if dim % align == 0:
        return max_tile       # max_tile is a multiple of `align`
    return dim                # rare fallback: full dim keeps the rule satisfied


@functools.partial(jax.jit, static_argnames=("single",))
def eag_forward(src, tar, indices, single=False):
    """Pallas EAG forward.

    src:     (B, N, C, ...) float
    tar:     (B, M, C, ...) float   (or (B, C, ...) if single=True)
    indices: (B, M) int             (or (B,)       if single=True)
    """
    if single:
        tar = jnp.expand_dims(tar, 1)
        indices = jnp.expand_dims(indices, 1)

    B, N = src.shape[0], src.shape[1]
    M = tar.shape[1]
    feat_shape = src.shape[2:]
    D = int(np.prod(feat_shape)) if feat_shape else 1

    src_f = src.reshape(B, N, D)
    tar_f = tar.reshape(B, M, D)
    idx_flat = indices.astype(jnp.int32).reshape(B * M)

    TN = _pick_tile(N, 256, 8)     # sublane-dim tile
    TD = _pick_tile(D, 512, 128)   # lane-dim tile (128-aligned when possible)

    grid = (B, pl.cdiv(N, TN), pl.cdiv(D, TD))

    # TODO(synk): if the caller can donate src, alias it to the output
    # (input_output_aliases) and only scatter the M touched rows to cut HBM
    # traffic from O(N*D) to O(M*D).

    out = pl.pallas_call(
        _eag_kernel,
        out_shape=jax.ShapeDtypeStruct((B, N, D), src.dtype),
        grid_spec=pltpu.PrefetchScalarGridSpec(
            num_scalar_prefetch=1,
            grid=grid,
            in_specs=[
                pl.BlockSpec((1, TN, TD), lambda b, n, d, idx: (b, n, d)),  # src
                pl.BlockSpec((1, M, TD), lambda b, n, d, idx: (b, 0, d)),   # tar
            ],
            out_specs=pl.BlockSpec((1, TN, TD), lambda b, n, d, idx: (b, n, d)),
        ),
        compiler_params=pltpu.CompilerParams(
            dimension_semantics=("parallel", "parallel", "parallel"),
            vmem_limit_bytes=32 * 1024 * 1024,
        ),
    )(idx_flat, src_f, tar_f)

    return out.reshape((B, N) + feat_shape)


def _eag_reference(src, tar, indices, single=False):
    """NumPy reference mirroring the PyTorch module."""
    src = np.asarray(src)
    tar = np.asarray(tar)
    indices = np.asarray(indices)
    if single:
        tar = np.expand_dims(tar, 1)
        indices = np.expand_dims(indices, 1)
    out = []
    for _src, _tar, idx in zip(src, tar, indices):
        mask = np.zeros_like(_src)
        mask[idx] = 1.0                      # repeated assignment, like torch
        erase = (1.0 - mask) * _src
        for m, i in enumerate(idx):          # torch.index_add accumulates
            erase[i] = erase[i] + _tar[m]
        out.append(erase)
    return np.stack(out)


if __name__ == "__main__":
    key = jax.random.PRNGKey(0)
    k1, k2, k3, k4 = jax.random.split(key, 4)

    # Primary test: D = C*W = 4*32 = 128 (lane-dense output blocks).
    B, N, M, C, W = 2, 8, 3, 4, 32
    src = jax.random.normal(k1, (B, N, C, W), dtype=jnp.float32)
    tar = jax.random.normal(k2, (B, M, C, W), dtype=jnp.float32)
    # includes a repeated index in batch 1 to exercise index_add accumulation
    indices = jnp.array([[0, 2, 5],
                         [1, 1, 7]], dtype=jnp.int32)

    out = jax.block_until_ready(eag_forward(src, tar, indices, single=False))
    ref = _eag_reference(src, tar, indices, single=False)
    np.testing.assert_allclose(np.asarray(out), ref, rtol=1e-5, atol=1e-5)

    # single=True path (M == 1 per batch)
    out_s = jax.block_until_ready(
        eag_forward(src, tar[:, 0], indices[:, 0], single=True))
    ref_s = _eag_reference(src, tar[:, 0], indices[:, 0], single=True)
    np.testing.assert_allclose(np.asarray(out_s), ref_s, rtol=1e-5, atol=1e-5)

    # Non-128-aligned feature dim (D = 32): exercises the full-D fallback block.
    B2, N2, M2, C2, W2 = 2, 16, 2, 4, 8
    src2 = jax.random.normal(k3, (B2, N2, C2, W2), dtype=jnp.float32)
    tar2 = jax.random.normal(k4, (B2, M2, C2, W2), dtype=jnp.float32)
    idx2 = jnp.array([[3, 3], [0, 15]], dtype=jnp.int32)
    out2 = jax.block_until_ready(eag_forward(src2, tar2, idx2, single=False))
    ref2 = _eag_reference(src2, tar2, idx2, single=False)
    np.testing.assert_allclose(np.asarray(out2), ref2, rtol=1e-5, atol=1e-5)

    print("KERNEL_OK")
</pallas_src>

<mosaic_0001>
module attributes {stable_mosaic.version = 11 : i64} {
  func.func @_eag_kernel(%arg0: i32, %arg1: i32, %arg2: i32, %arg3: memref<6xi32, #tpu.memory_space<smem>>, %arg4: memref<1x8x128xf32, #tpu.memory_space<vmem>>, %arg5: memref<1x3x128xf32, #tpu.memory_space<vmem>>, %arg6: memref<1x8x128xf32, #tpu.memory_space<vmem>>) attributes {dimension_semantics = [#tpu.dimension_semantics<parallel>, #tpu.dimension_semantics<parallel>, #tpu.dimension_semantics<parallel>], iteration_bounds = array<i64: 2, 1, 1>, scalar_prefetch = 1 : i64, scratch_operands = 0 : i64, tpu.core_type = #tpu.core_type<tc>, window_params = [{transform_indices = @transform_0, window_bounds = array<i64: 1, 8, 128>}, {transform_indices = @transform_1, window_bounds = array<i64: 1, 3, 128>}, {transform_indices = @transform_2, window_bounds = array<i64: 1, 8, 128>}]} {
    %0 = tpu.iota {dimensions = array<i32: 0>} : vector<8x1xi32>
    %c8_i32 = arith.constant 8 : i32
    %1 = arith.muli %arg1, %c8_i32 : i32
    %2 = vector.broadcast %1 : i32 to vector<8x1xi32>
    %3 = arith.addi %0, %2 : vector<8x1xi32>
    %c0 = arith.constant 0 : index
    %c0_0 = arith.constant 0 : index
    %c0_1 = arith.constant 0 : index
    %4 = vector.load %arg4[%c0, %c0_0, %c0_1] : memref<1x8x128xf32, #tpu.memory_space<vmem>>, vector<1x8x128xf32>
    %5 = vector.shape_cast %4 : vector<1x8x128xf32> to vector<8x128xf32>
    %false = arith.constant false
    %6 = vector.broadcast %false : i1 to vector<8x1xi1>
    %cst = arith.constant 0.000000e+00 : f32
    %7 = vector.broadcast %cst : f32 to vector<8x128xf32>
    %c3_i32 = arith.constant 3 : i32
    %8 = arith.muli %arg0, %c3_i32 : i32
    %c0_i32 = arith.constant 0 : i32
    %9 = arith.addi %8, %c0_i32 : i32
    %10 = arith.index_cast %9 : i32 to index
    %11 = memref.load %arg3[%10] : memref<6xi32, #tpu.memory_space<smem>>
    %12 = vector.broadcast %11 : i32 to vector<8x1xi32>
    %13 = arith.cmpi eq, %3, %12 : vector<8x1xi32>
    %14 = arith.ori %6, %13 : vector<8x1xi1>
    %c0_2 = arith.constant 0 : index
    %c0_3 = arith.constant 0 : index
    %c0_4 = arith.constant 0 : index
    %15 = vector.load %arg5[%c0_2, %c0_3, %c0_4] : memref<1x3x128xf32, #tpu.memory_space<vmem>>, vector<1x1x128xf32>
    %16 = vector.shape_cast %15 : vector<1x1x128xf32> to vector<1x128xf32>
    %cst_5 = arith.constant 0.000000e+00 : f32
    %17 = vector.shape_cast %13 : vector<8x1xi1> to vector<8x1xi1>
    %18 = vector.broadcast %17 : vector<8x1xi1> to vector<8x128xi1>
    %19 = vector.shape_cast %16 : vector<1x128xf32> to vector<1x128xf32>
    %20 = vector.broadcast %19 : vector<1x128xf32> to vector<8x128xf32>
    %21 = vector.broadcast %cst_5 : f32 to vector<8x128xf32>
    %22 = arith.select %18, %20, %21 : vector<8x128xi1>, vector<8x128xf32>
    %23 = arith.addf %7, %22 : vector<8x128xf32>
    %c3_i32_6 = arith.constant 3 : i32
    %24 = arith.muli %arg0, %c3_i32_6 : i32
    %c1_i32 = arith.constant 1 : i32
    %25 = arith.addi %24, %c1_i32 : i32
    %26 = arith.index_cast %25 : i32 to index
    %27 = memref.load %arg3[%26] : memref<6xi32, #tpu.memory_space<smem>>
    %28 = vector.broadcast %27 : i32 to vector<8x1xi32>
    %29 = arith.cmpi eq, %3, %28 : vector<8x1xi32>
    %30 = arith.ori %14, %29 : vector<8x1xi1>
    %c0_7 = arith.constant 0 : index
    %c1 = arith.constant 1 : index
    %c0_8 = arith.constant 0 : index
    %31 = vector.load %arg5[%c0_7, %c1, %c0_8] : memref<1x3x128xf32, #tpu.memory_space<vmem>>, vector<1x1x128xf32>
    %32 = vector.shape_cast %31 : vector<1x1x128xf32> to vector<1x128xf32>
    %cst_9 = arith.constant 0.000000e+00 : f32
    %33 = vector.shape_cast %29 : vector<8x1xi1> to vector<8x1xi1>
    %34 = vector.broadcast %33 : vector<8x1xi1> to vector<8x128xi1>
    %35 = vector.shape_cast %32 : vector<1x128xf32> to vector<1x128xf32>
    %36 = vector.broadcast %35 : vector<1x128xf32> to vector<8x128xf32>
    %37 = vector.broadcast %cst_9 : f32 to vector<8x128xf32>
    %38 = arith.select %34, %36, %37 : vector<8x128xi1>, vector<8x128xf32>
    %39 = arith.addf %23, %38 : vector<8x128xf32>
    %c3_i32_10 = arith.constant 3 : i32
    %40 = arith.muli %arg0, %c3_i32_10 : i32
    %c2_i32 = arith.constant 2 : i32
    %41 = arith.addi %40, %c2_i32 : i32
    %42 = arith.index_cast %41 : i32 to index
    %43 = memref.load %arg3[%42] : memref<6xi32, #tpu.memory_space<smem>>
    %44 = vector.broadcast %43 : i32 to vector<8x1xi32>
    %45 = arith.cmpi eq, %3, %44 : vector<8x1xi32>
    %46 = arith.ori %30, %45 : vector<8x1xi1>
    %c0_11 = arith.constant 0 : index
    %c2 = arith.constant 2 : index
    %c0_12 = arith.constant 0 : index
    %47 = vector.load %arg5[%c0_11, %c2, %c0_12] : memref<1x3x128xf32, #tpu.memory_space<vmem>>, vector<1x1x128xf32>
    %48 = vector.shape_cast %47 : vector<1x1x128xf32> to vector<1x128xf32>
    %cst_13 = arith.constant 0.000000e+00 : f32
    %49 = vector.shape_cast %45 : vector<8x1xi1> to vector<8x1xi1>
    %50 = vector.broadcast %49 : vector<8x1xi1> to vector<8x128xi1>
    %51 = vector.shape_cast %48 : vector<1x128xf32> to vector<1x128xf32>
    %52 = vector.broadcast %51 : vector<1x128xf32> to vector<8x128xf32>
    %53 = vector.broadcast %cst_13 : f32 to vector<8x128xf32>
    %54 = arith.select %50, %52, %53 : vector<8x128xi1>, vector<8x128xf32>
    %55 = arith.addf %39, %54 : vector<8x128xf32>
    %cst_14 = arith.constant 0.000000e+00 : f32
    %56 = vector.broadcast %cst_14 : f32 to vector<8x128xf32>
    %57 = vector.shape_cast %46 : vector<8x1xi1> to vector<8x1xi1>
    %58 = vector.broadcast %57 : vector<8x1xi1> to vector<8x128xi1>
    %59 = arith.select %58, %56, %5 : vector<8x128xi1>, vector<8x128xf32>
    %60 = arith.addf %59, %55 : vector<8x128xf32>
    %c0_15 = arith.constant 0 : index
    %c0_16 = arith.constant 0 : index
    %c0_17 = arith.constant 0 : index
    %61 = vector.load %arg6[%c0_15, %c0_16, %c0_17] : memref<1x8x128xf32, #tpu.memory_space<vmem>>, vector<1x8x128xf32>
    %62 = vector.shape_cast %61 : vector<1x8x128xf32> to vector<8x128xf32>
    %63 = vector.shape_cast %60 : vector<8x128xf32> to vector<1x8x128xf32>
    tpu.vector_store %arg6[%c0_15, %c0_16, %c0_17], %63 {strides = array<i32>} : memref<1x8x128xf32, #tpu.memory_space<vmem>>, vector<1x8x128xf32>,
    return
  }
  func.func @transform_0(%arg0: i32, %arg1: i32, %arg2: i32, %arg3: memref<6xi32, #tpu.memory_space<smem>>) -> (i32, i32, i32) {
    %c0_i32 = arith.constant 0 : i32
    return %arg0, %arg1, %arg2 : i32, i32, i32
  }
  func.func @transform_1(%arg0: i32, %arg1: i32, %arg2: i32, %arg3: memref<6xi32, #tpu.memory_space<smem>>) -> (i32, i32, i32) {
    %c0_i32 = arith.constant 0 : i32
    %c0_i32_0 = arith.constant 0 : i32
    return %arg0, %c0_i32, %arg2 : i32, i32, i32
  }
  func.func @transform_2(%arg0: i32, %arg1: i32, %arg2: i32, %arg3: memref<6xi32, #tpu.memory_space<smem>>) -> (i32, i32, i32) {
    %c0_i32 = arith.constant 0 : i32
    return %arg0, %arg1, %arg2 : i32, i32, i32
  }
}

</mosaic_0001>

<bundles_post_ra>
// kernel: eag_forward.1
= control target key start
LH: loop header
LB: loop body
LE: loop exit
PB: predicated region body
PF: predicated region fallthrough
CT: control target
= control target key end

     0   :  { %s457_s15 = smov [#allocation3]   ;;  %s521_s0 = inlined_call_operand.vmem [shape: s32[6], index: 0, kind: input, shape index: {}]   ;;  %s522_s1 = inlined_call_operand.vmem [shape: f32[2,8,128], index: 1, kind: input, shape index: {}]   ;;  %s523_s2 = inlined_call_operand.vmem [shape: f32[2,3,128], index: 2, kind: input, shape index: {}]   ;;  %s524_s3 = inlined_call_operand.vmem [shape: f32[2,8,128], index: 3, kind: output, shape index: {}]  }
   0x1   :  { %s9_s14 = sshll.u32 %s521_s0, 4  ;;  %s10_s14 = int_to_ptr.vmem [resolvable:$true] %s9_s14 }
   0x2   :  { %12 = dma.vmem_to_smem %s10_s14, 16, %s457_s15, [#allocation2] }
   0x3   :  { %443 = dma.done.wait [#allocation2], 16 }
   0x4   :  { %444 = vsyncadd [#allocation2], 4294967280 }
   0x5   :  { %15 = sfence }
   0x6   :  { %s481_s16 = smov 0   ;;  %s483_s17 = smov 0  }
   0x7   :  { %s485_s18 = smov 0  }
   0x8 LB: > { %s40_s0 = sadd.s32 1, %s451_s17  ;;  %p385_p0 = scmp.ge.s32.totalorder %s455_s18, 1  ;;  %s455_s18 = sphi %s485_s18, %s21_s18   ;;  %s451_s17 = sphi %s483_s17, %s526_s17   ;;  %s447_s16 = sphi %s481_s16, %s525_s16  }
   0x9   : > { %p42_p1 = scmp.ge.s32.totalorder %s40_s0, 2  ;;  %p167_p2 = scmp.lt.s32.totalorder %s455_s18, 3 }
   0xb   : > { %s528_s0 = smov (%p42_p1, %s40_s0), 0  ;;  %p168_p3 = pnand %p385_p0, %p167_p2 }
   0xc   : > { %p206_p4 = scmp.lt.s32.totalorder (!%p168_p3), %s447_s16, 1  ;;  %s239_s19 = smul.u32 (!%p168_p3), 3, %s447_s16 }
   0xd   : > { %171 = sbr.rel (%p168_p3) target bundleno = 31 (0x1f), region = 28 }
   0xe   : > { %s240_s20 = sld [smem:[#allocation3 + %s239_s19]] (!%p168_p3)  ;;  %s249_s21 = sadd.s32 (!%p168_p3), 1, %s239_s19 }
   0xf   : > { %s250_s26 = sld [smem:[#allocation3 + %s249_s21]] (!%p168_p3)  ;;  %s260_s27 = sadd.s32 (!%p168_p3), 2, %s239_s19 }
  0x10   : > { %s261_s29 = sld [smem:[#allocation3 + %s260_s27]] (!%p168_p3) }
  0x12   : > { %s530_s16 = smov (!%p206_p4, %s447_s16), 1  ;;  %v233_v0 = vlaneseq }
  0x13   : > { %s387_s22 = sshll.u32 %s530_s16, 2  ;;  %s386_s28 = sshll.u32 %s530_s16, 3 }
  0x14   : > { %s222_s25 = scalar_lea.vmem %s523_s2, %s387_s22  ;;  %v234_v1 = vshrl.u32 %v233_v0, 7  ;;  %v241_v3 = vstv %s240_s20  ;;  %s215_s5 = scalar_lea.vmem %s522_s1, %s386_s28 }
  0x15   : > { %v416_v2 = vld [vmem:[%s222_s25] ss:$0 sm:$0xff]  ;;  %v417_v4 = vld [vmem:[%s222_s25 + $0x1] ss:$0 sm:$0xff]  ;;  %v251_v6 = vstv %s250_s26  ;;  %v418_v7 = vld [vmem:[%s222_s25 + $0x2] ss:$0 sm:$0xff]  ;;  %s232_s8 = scalar_lea.vmem %s524_s3, %s386_s28 }
  0x16   : > { %vm242_vm0 = vcmp.eq.s32.totalorder %v234_v1, %v241_v3  ;;  %vm252_vm1 = vcmp.eq.s32.totalorder %v234_v1, %v251_v6  ;;  %v238_v8 = vld [vmem:[%s215_s5] sm:$0xff]  ;;  %v262_v10 = vstv %s261_s29 }
  0x17   : > { %v247_v5 = vsel %vm242_vm0, %v416_v2, 0.0  ;;  %vm253_vm2 = vmor %vm242_vm0, %vm252_vm1  ;;  %v258_v9 = vsel %vm252_vm1, %v417_v4, 0.0  ;;  %vm263_vm3 = vcmp.eq.s32.totalorder %v234_v1, %v262_v10 }
  0x18   : > { %v259_v11 = vadd.f32 %v258_v9, %v247_v5  ;;  %vm264_vm4 = vmor %vm253_vm2, %vm263_vm3  ;;  %v269_v12 = vsel %vm263_vm3, %v418_v7, 0.0 }
  0x19   : > { %v273_v14 = vsel %vm264_vm4, 0.0, %v238_v8 }
  0x1a   : > { %v270_v13 = vadd.f32 %v269_v12, %v259_v11 }
  0x1c   : > { %v274_v15 = vadd.f32 %v273_v14, %v270_v13 }
  0x1e   : > { %275 = vst [vmem:[%s232_s8] sm:$0xff] %v274_v15 }
  0x1f PF: > { %s21_s18 = sadd.s32 1, %s455_s18   ;;  %s525_s16 = smov %s451_s17 }
  0x20   : > { %p18_p5 = scmp.ge.s32.totalorder %s21_s18, 4   ;;  %s526_s17 = smov %s528_s0 }
  0x22   :  { %20 = sbr.rel (!%p18_p5) target bundleno = 8 (0x8), region = 61 }

</bundles_post_ra>
